<compile_context>
chip_gen: v7x
topology: tpu7x:2x2x1
jax: 0.10.0
libtpu: 0.0.40
codegen_flags: <defaults>
</compile_context>

<pallas_src>
import functools

import jax
import jax.numpy as jnp
from jax.experimental import pallas as pl
from jax.experimental.pallas import tpu as pltpu


def _round_up(x, m):
    return ((x + m - 1) // m) * m


def _pad2(x, rows, cols):
    return jnp.pad(x, ((0, rows - x.shape[0]), (0, cols - x.shape[1])))


def _sage_agg_kernel(a_ref, z_ref, y_ref, dinv_ref, o_ref, acc_ref, *, apply_relu):
    """One (row-block i, reduction-block k) step of SAGEConv('mean') combine.

    a_ref   : (T, T)       bf16  0/1 adjacency tile A[i, k]
    z_ref   : (T, Dout_p)  bf16  projected neighbor feats Z[k] = X @ W_neigh
    y_ref   : (T, Dout_p)  f32   self path Y[i] = X @ W_self + b
    dinv_ref: (T, 1)       f32   1 / in-degree for row block i
    o_ref   : (T, Dout_p)        output row block
    acc_ref : (T, Dout_p)  f32   VMEM accumulator (persists across k)
    """
    k = pl.program_id(1)

    @pl.when(k == 0)
    def _init():
        acc_ref[...] = jnp.zeros_like(acc_ref)

    # Unnormalized neighbor sum on the MXU (bf16 inputs, f32 accumulation).
    acc_ref[...] += jnp.dot(a_ref[...], z_ref[...], preferred_element_type=jnp.float32)

    @pl.when(k == pl.num_programs(1) - 1)
    def _finalize():
        out = y_ref[...] + dinv_ref[...] * acc_ref[...]
        if apply_relu:
            out = jnp.maximum(out, 0.0)
        o_ref[...] = out.astype(o_ref.dtype)


def sage_aggregate(a_bf16, z_bf16, y_self, inv_deg, *, apply_relu, out_dtype, tile):
    """Padded SAGEConv('mean') combine: out = Y + diag(1/deg) @ (A @ Z)."""
    n_p, dout_p = y_self.shape
    t = tile
    assert n_p % t == 0 and dout_p % 128 == 0 and a_bf16.shape == (n_p, n_p)

    kernel = functools.partial(_sage_agg_kernel, apply_relu=apply_relu)
    return pl.pallas_call(
        kernel,
        out_shape=jax.ShapeDtypeStruct((n_p, dout_p), out_dtype),
        grid=(n_p // t, n_p // t),
        in_specs=[
            pl.BlockSpec((t, t), lambda i, k: (i, k)),        # A[i, k]   bf16
            pl.BlockSpec((t, dout_p), lambda i, k: (k, 0)),   # Z[k]      bf16
            pl.BlockSpec((t, dout_p), lambda i, k: (i, 0)),   # Y[i]      f32
            pl.BlockSpec((t, 1), lambda i, k: (i, 0)),        # 1/deg[i]  f32
        ],
        out_specs=pl.BlockSpec((t, dout_p), lambda i, k: (i, 0)),
        scratch_shapes=[pltpu.VMEM((t, dout_p), jnp.float32)],
        compiler_params=pltpu.CompilerParams(
            dimension_semantics=("parallel", "arbitrary"),
        ),
    )(a_bf16, z_bf16, y_self, inv_deg)


def graphsage_forward(adj, features, params, *, tile=512):
    """adj[i, j] = 1.0 iff there is an edge j -> i (j is an in-neighbor of i)."""
    n, _ = features.shape
    hid = params["w_self1"].shape[1]
    dout = params["w_self2"].shape[1]

    # Tile sized for all generations (footprint at T=512 is only a few MiB);
    # shrink for tiny graphs.
    t = min(tile, _round_up(n, 128))
    n_p = _round_up(n, t)
    hid_p = _round_up(hid, 128)
    dout_p = _round_up(dout, 128)

    # Exact 0/1 adjacency in bf16; mean normalization applied in-kernel in f32.
    a_p = _pad2(adj, n_p, n_p).astype(jnp.bfloat16)
    deg = jnp.clip(jnp.sum(adj, axis=1, keepdims=True), 1.0, None)
    inv_deg = jnp.pad(1.0 / deg, ((0, n_p - n), (0, 0))).astype(jnp.float32)

    x = features.astype(jnp.float32)

    # ---- layer 1: projections hoisted out of the grid (plain XLA GEMMs) ----
    z1 = _pad2((x @ params["w_neigh1"]).astype(jnp.bfloat16), n_p, hid_p)
    y1 = _pad2(x @ params["w_self1"] + params["b1"], n_p, hid_p).astype(jnp.float32)
    h = sage_aggregate(a_p, z1, y1, inv_deg,
                       apply_relu=True, out_dtype=jnp.bfloat16, tile=t)

    # ---- layer 2 ----
    w_neigh2 = _pad2(params["w_neigh2"], hid_p, dout_p)
    w_self2 = _pad2(params["w_self2"], hid_p, dout_p)
    b2 = _pad2(params["b2"], 1, dout_p)
    z2 = (h @ w_neigh2).astype(jnp.bfloat16)
    y2 = (h.astype(jnp.float32) @ w_self2 + b2).astype(jnp.float32)
    logits_p = sage_aggregate(a_p, z2, y2, inv_deg,
                              apply_relu=False, out_dtype=jnp.float32, tile=t)
    return logits_p[:n, :dout]


def init_params(key, in_dim, hidden_dim, out_dim):
    ks = jax.random.split(key, 6)
    s1 = 1.0 / jnp.sqrt(in_dim)
    s2 = 1.0 / jnp.sqrt(hidden_dim)
    return {
        "w_self1": jax.random.uniform(ks[0], (in_dim, hidden_dim), jnp.float32, -s1, s1),
        "w_neigh1": jax.random.uniform(ks[1], (in_dim, hidden_dim), jnp.float32, -s1, s1),
        "b1": jax.random.uniform(ks[2], (1, hidden_dim), jnp.float32, -s1, s1),
        "w_self2": jax.random.uniform(ks[3], (hidden_dim, out_dim), jnp.float32, -s2, s2),
        "w_neigh2": jax.random.uniform(ks[4], (hidden_dim, out_dim), jnp.float32, -s2, s2),
        "b2": jax.random.uniform(ks[5], (1, out_dim), jnp.float32, -s2, s2),
    }


if __name__ == "__main__":
    key = jax.random.PRNGKey(0)
    k_graph, k_feat, k_param = jax.random.split(key, 3)

    num_nodes = 64
    in_dim, hidden_dim, out_dim = 32, 32, 16

    # Deterministic random graph (dense 0/1 adjacency, no self-loops).
    adj = (jax.random.uniform(k_graph, (num_nodes, num_nodes)) < 0.1).astype(jnp.float32)
    adj = adj * (1.0 - jnp.eye(num_nodes, dtype=jnp.float32))

    features = jax.random.normal(k_feat, (num_nodes, in_dim), jnp.float32)
    params = init_params(k_param, in_dim, hidden_dim, out_dim)

    logits = jax.jit(graphsage_forward)(adj, features, params)
    jax.block_until_ready(logits)

    # Pure-JAX f32 reference (mean aggregation over in-neighbors).
    deg = jnp.clip(jnp.sum(adj, axis=1, keepdims=True), 1.0, None)
    a_norm = adj / deg
    h_ref = jnp.maximum(
        features @ params["w_self1"] + (a_norm @ features) @ params["w_neigh1"] + params["b1"],
        0.0,
    )
    logits_ref = h_ref @ params["w_self2"] + (a_norm @ h_ref) @ params["w_neigh2"] + params["b2"]

    assert logits.shape == logits_ref.shape
    max_err = float(jnp.max(jnp.abs(logits - logits_ref)))
    # bf16 on Z / h (MXU inputs) with f32 accumulation + exact 0/1 A and f32
    # 1/deg scaling -> small, bf16-rounding-level error.
    assert jnp.allclose(logits, logits_ref, atol=3e-2, rtol=3e-2), max_err

    print("KERNEL_OK")
</pallas_src>

<mosaic_0001>
module attributes {stable_mosaic.version = 11 : i64} {
  func.func @_sage_agg_kernel(%arg0: i32, %arg1: i32, %arg2: memref<128x128xbf16, #tpu.memory_space<vmem>>, %arg3: memref<128x128xbf16, #tpu.memory_space<vmem>>, %arg4: memref<128x128xf32, #tpu.memory_space<vmem>>, %arg5: memref<128x1xf32, #tpu.memory_space<vmem>>, %arg6: memref<128x128xbf16, #tpu.memory_space<vmem>>, %arg7: memref<128x128xf32, #tpu.memory_space<vmem>>) attributes {dimension_semantics = [#tpu.dimension_semantics<parallel>, #tpu.dimension_semantics<arbitrary>], iteration_bounds = array<i64: 1, 1>, scalar_prefetch = 0 : i64, scratch_operands = 1 : i64, tpu.core_type = #tpu.core_type<tc>, window_params = [{transform_indices = @transform_0, window_bounds = array<i64: 128, 128>}, {transform_indices = @transform_1, window_bounds = array<i64: 128, 128>}, {transform_indices = @transform_2, window_bounds = array<i64: 128, 128>}, {transform_indices = @transform_3, window_bounds = array<i64: 128, 1>}, {transform_indices = @transform_4, window_bounds = array<i64: 128, 128>}]} {
    %c0_i32 = arith.constant 0 : i32
    %0 = arith.cmpi eq, %arg1, %c0_i32 : i32
    %1 = arith.extui %0 : i1 to i32
    %c0_i32_0 = arith.constant 0 : i32
    %2 = arith.cmpi ne, %1, %c0_i32_0 : i32
    scf.if %2 {
      %cst_10 = arith.constant 0.000000e+00 : f32
      %12 = vector.broadcast %cst_10 : f32 to vector<128x128xf32>
      %c0_11 = arith.constant 0 : index
      %c0_12 = arith.constant 0 : index
      %13 = vector.load %arg7[%c0_11, %c0_12] : memref<128x128xf32, #tpu.memory_space<vmem>>, vector<128x128xf32>
      tpu.vector_store %arg7[%c0_11, %c0_12], %12 {strides = array<i32>} : memref<128x128xf32, #tpu.memory_space<vmem>>, vector<128x128xf32>,
    } else {
    }
    %c0 = arith.constant 0 : index
    %c0_1 = arith.constant 0 : index
    %3 = vector.load %arg7[%c0, %c0_1] : memref<128x128xf32, #tpu.memory_space<vmem>>, vector<128x128xf32>
    %c0_2 = arith.constant 0 : index
    %c0_3 = arith.constant 0 : index
    %4 = vector.load %arg2[%c0_2, %c0_3] : memref<128x128xbf16, #tpu.memory_space<vmem>>, vector<128x128xbf16>
    %c0_4 = arith.constant 0 : index
    %c0_5 = arith.constant 0 : index
    %5 = vector.load %arg3[%c0_4, %c0_5] : memref<128x128xbf16, #tpu.memory_space<vmem>>, vector<128x128xbf16>
    %cst = arith.constant dense<0.000000e+00> : vector<128x128xf32>
    %6 = tpu.matmul %4, %5, %cst {dimension_numbers = #tpu.dot_dimension_numbers<[1], [0], [0], [1], [0, 0, 1, 1], [], []>} : vector<128x128xbf16>, vector<128x128xbf16>, vector<128x128xf32> -> vector<128x128xf32>
    %7 = arith.addf %3, %6 : vector<128x128xf32>
    %c0_6 = arith.constant 0 : index
    %c0_7 = arith.constant 0 : index
    %8 = vector.load %arg7[%c0_6, %c0_7] : memref<128x128xf32, #tpu.memory_space<vmem>>, vector<128x128xf32>
    tpu.vector_store %arg7[%c0_6, %c0_7], %7 {strides = array<i32>} : memref<128x128xf32, #tpu.memory_space<vmem>>, vector<128x128xf32>,
    %c0_i32_8 = arith.constant 0 : i32
    %9 = arith.cmpi eq, %arg1, %c0_i32_8 : i32
    %10 = arith.extui %9 : i1 to i32
    %c0_i32_9 = arith.constant 0 : i32
    %11 = arith.cmpi ne, %10, %c0_i32_9 : i32
    scf.if %11 {
      %c0_10 = arith.constant 0 : index
      %c0_11 = arith.constant 0 : index
      %12 = vector.load %arg4[%c0_10, %c0_11] : memref<128x128xf32, #tpu.memory_space<vmem>>, vector<128x128xf32>
      %c0_12 = arith.constant 0 : index
      %c0_13 = arith.constant 0 : index
      %13 = vector.load %arg5[%c0_12, %c0_13] : memref<128x1xf32, #tpu.memory_space<vmem>>, vector<128x1xf32>
      %c0_14 = arith.constant 0 : index
      %c0_15 = arith.constant 0 : index
      %14 = vector.load %arg7[%c0_14, %c0_15] : memref<128x128xf32, #tpu.memory_space<vmem>>, vector<128x128xf32>
      %15 = vector.broadcast %13 : vector<128x1xf32> to vector<128x128xf32>
      %16 = arith.mulf %15, %14 : vector<128x128xf32>
      %17 = arith.addf %12, %16 : vector<128x128xf32>
      %cst_16 = arith.constant 0.000000e+00 : f32
      %18 = vector.broadcast %cst_16 : f32 to vector<128x128xf32>
      %19 = arith.maximumf %17, %18 : vector<128x128xf32>
      %20 = arith.truncf %19 : vector<128x128xf32> to vector<128x128xbf16>
      %c0_17 = arith.constant 0 : index
      %c0_18 = arith.constant 0 : index
      %21 = vector.load %arg6[%c0_17, %c0_18] : memref<128x128xbf16, #tpu.memory_space<vmem>>, vector<128x128xbf16>
      tpu.vector_store %arg6[%c0_17, %c0_18], %20 {strides = array<i32>} : memref<128x128xbf16, #tpu.memory_space<vmem>>, vector<128x128xbf16>,
    } else {
    }
    return
  }
  func.func @transform_0(%arg0: i32, %arg1: i32) -> (i32, i32) {
    %c0_i32 = arith.constant 0 : i32
    return %arg0, %arg1 : i32, i32
  }
  func.func @transform_1(%arg0: i32, %arg1: i32) -> (i32, i32) {
    %c0_i32 = arith.constant 0 : i32
    %c0_i32_0 = arith.constant 0 : i32
    return %arg1, %c0_i32 : i32, i32
  }
  func.func @transform_2(%arg0: i32, %arg1: i32) -> (i32, i32) {
    %c0_i32 = arith.constant 0 : i32
    %c0_i32_0 = arith.constant 0 : i32
    return %arg0, %c0_i32 : i32, i32
  }
  func.func @transform_3(%arg0: i32, %arg1: i32) -> (i32, i32) {
    %c0_i32 = arith.constant 0 : i32
    %c0_i32_0 = arith.constant 0 : i32
    return %arg0, %c0_i32 : i32, i32
  }
  func.func @transform_4(%arg0: i32, %arg1: i32) -> (i32, i32) {
    %c0_i32 = arith.constant 0 : i32
    %c0_i32_0 = arith.constant 0 : i32
    return %arg0, %c0_i32 : i32, i32
  }
}

module attributes {stable_mosaic.version = 11 : i64} {
  func.func @_sage_agg_kernel(%arg0: i32, %arg1: i32, %arg2: memref<128x128xbf16, #tpu.memory_space<vmem>>, %arg3: memref<128x128xbf16, #tpu.memory_space<vmem>>, %arg4: memref<128x128xf32, #tpu.memory_space<vmem>>, %arg5: memref<128x1xf32, #tpu.memory_space<vmem>>, %arg6: memref<128x128xf32, #tpu.memory_space<vmem>>, %arg7: memref<128x128xf32, #tpu.memory_space<vmem>>) attributes {dimension_semantics = [#tpu.dimension_semantics<parallel>, #tpu.dimension_semantics<arbitrary>], iteration_bounds = array<i64: 1, 1>, scalar_prefetch = 0 : i64, scratch_operands = 1 : i64, tpu.core_type = #tpu.core_type<tc>, window_params = [{transform_indices = @transform_0, window_bounds = array<i64: 128, 128>}, {transform_indices = @transform_1, window_bounds = array<i64: 128, 128>}, {transform_indices = @transform_2, window_bounds = array<i64: 128, 128>}, {transform_indices = @transform_3, window_bounds = array<i64: 128, 1>}, {transform_indices = @transform_4, window_bounds = array<i64: 128, 128>}]} {
    %c0_i32 = arith.constant 0 : i32
    %0 = arith.cmpi eq, %arg1, %c0_i32 : i32
    %1 = arith.extui %0 : i1 to i32
    %c0_i32_0 = arith.constant 0 : i32
    %2 = arith.cmpi ne, %1, %c0_i32_0 : i32
    scf.if %2 {
      %cst_10 = arith.constant 0.000000e+00 : f32
      %12 = vector.broadcast %cst_10 : f32 to vector<128x128xf32>
      %c0_11 = arith.constant 0 : index
      %c0_12 = arith.constant 0 : index
      %13 = vector.load %arg7[%c0_11, %c0_12] : memref<128x128xf32, #tpu.memory_space<vmem>>, vector<128x128xf32>
      tpu.vector_store %arg7[%c0_11, %c0_12], %12 {strides = array<i32>} : memref<128x128xf32, #tpu.memory_space<vmem>>, vector<128x128xf32>,
    } else {
    }
    %c0 = arith.constant 0 : index
    %c0_1 = arith.constant 0 : index
    %3 = vector.load %arg7[%c0, %c0_1] : memref<128x128xf32, #tpu.memory_space<vmem>>, vector<128x128xf32>
    %c0_2 = arith.constant 0 : index
    %c0_3 = arith.constant 0 : index
    %4 = vector.load %arg2[%c0_2, %c0_3] : memref<128x128xbf16, #tpu.memory_space<vmem>>, vector<128x128xbf16>
    %c0_4 = arith.constant 0 : index
    %c0_5 = arith.constant 0 : index
    %5 = vector.load %arg3[%c0_4, %c0_5] : memref<128x128xbf16, #tpu.memory_space<vmem>>, vector<128x128xbf16>
    %cst = arith.constant dense<0.000000e+00> : vector<128x128xf32>
    %6 = tpu.matmul %4, %5, %cst {dimension_numbers = #tpu.dot_dimension_numbers<[1], [0], [0], [1], [0, 0, 1, 1], [], []>} : vector<128x128xbf16>, vector<128x128xbf16>, vector<128x128xf32> -> vector<128x128xf32>
    %7 = arith.addf %3, %6 : vector<128x128xf32>
    %c0_6 = arith.constant 0 : index
    %c0_7 = arith.constant 0 : index
    %8 = vector.load %arg7[%c0_6, %c0_7] : memref<128x128xf32, #tpu.memory_space<vmem>>, vector<128x128xf32>
    tpu.vector_store %arg7[%c0_6, %c0_7], %7 {strides = array<i32>} : memref<128x128xf32, #tpu.memory_space<vmem>>, vector<128x128xf32>,
    %c0_i32_8 = arith.constant 0 : i32
    %9 = arith.cmpi eq, %arg1, %c0_i32_8 : i32
    %10 = arith.extui %9 : i1 to i32
    %c0_i32_9 = arith.constant 0 : i32
    %11 = arith.cmpi ne, %10, %c0_i32_9 : i32
    scf.if %11 {
      %c0_10 = arith.constant 0 : index
      %c0_11 = arith.constant 0 : index
      %12 = vector.load %arg4[%c0_10, %c0_11] : memref<128x128xf32, #tpu.memory_space<vmem>>, vector<128x128xf32>
      %c0_12 = arith.constant 0 : index
      %c0_13 = arith.constant 0 : index
      %13 = vector.load %arg5[%c0_12, %c0_13] : memref<128x1xf32, #tpu.memory_space<vmem>>, vector<128x1xf32>
      %c0_14 = arith.constant 0 : index
      %c0_15 = arith.constant 0 : index
      %14 = vector.load %arg7[%c0_14, %c0_15] : memref<128x128xf32, #tpu.memory_space<vmem>>, vector<128x128xf32>
      %15 = vector.broadcast %13 : vector<128x1xf32> to vector<128x128xf32>
      %16 = arith.mulf %15, %14 : vector<128x128xf32>
      %17 = arith.addf %12, %16 : vector<128x128xf32>
      %c0_16 = arith.constant 0 : index
      %c0_17 = arith.constant 0 : index
      %18 = vector.load %arg6[%c0_16, %c0_17] : memref<128x128xf32, #tpu.memory_space<vmem>>, vector<128x128xf32>
      tpu.vector_store %arg6[%c0_16, %c0_17], %17 {strides = array<i32>} : memref<128x128xf32, #tpu.memory_space<vmem>>, vector<128x128xf32>,
    } else {
    }
    return
  }
  func.func @transform_0(%arg0: i32, %arg1: i32) -> (i32, i32) {
    %c0_i32 = arith.constant 0 : i32
    return %arg0, %arg1 : i32, i32
  }
  func.func @transform_1(%arg0: i32, %arg1: i32) -> (i32, i32) {
    %c0_i32 = arith.constant 0 : i32
    %c0_i32_0 = arith.constant 0 : i32
    return %arg1, %c0_i32 : i32, i32
  }
  func.func @transform_2(%arg0: i32, %arg1: i32) -> (i32, i32) {
    %c0_i32 = arith.constant 0 : i32
    %c0_i32_0 = arith.constant 0 : i32
    return %arg0, %c0_i32 : i32, i32
  }
  func.func @transform_3(%arg0: i32, %arg1: i32) -> (i32, i32) {
    %c0_i32 = arith.constant 0 : i32
    %c0_i32_0 = arith.constant 0 : i32
    return %arg0, %c0_i32 : i32, i32
  }
  func.func @transform_4(%arg0: i32, %arg1: i32) -> (i32, i32) {
    %c0_i32 = arith.constant 0 : i32
    %c0_i32_0 = arith.constant 0 : i32
    return %arg0, %c0_i32 : i32, i32
  }
}

</mosaic_0001>

<bundles_post_ra>
// kernel: graphsage_forward.3
= control target key start
LH: loop header
LB: loop body
LE: loop exit
PB: predicated region body
PF: predicated region fallthrough
CT: control target
= control target key end

     0   :  { %v593_v1 = vmov 0   ;;  %s823_s1 = inlined_call_operand.vmem [shape: bf16[128,128], index: 1, kind: input, shape index: {}]   ;;  %s824_s0 = inlined_call_operand.vmem [shape: bf16[128,128], index: 0, kind: input, shape index: {}]   ;;  %s825_s3 = inlined_call_operand.vmem [shape: f32[128,1], index: 3, kind: input, shape index: {}]   ;;  %s826_s2 = inlined_call_operand.vmem [shape: f32[128,128], index: 2, kind: input, shape index: {}]   ;;  %s827_s4 = inlined_call_operand.vmem [shape: f32[128,128], index: 4, kind: output, shape index: {}]  }
   0x1   :  { %v577_v0 = vld [vmem:[%s823_s1] sm:$0xff]   ;;  %576 = vset.pattern.permute.xlu1 %v593_v1  ;;  %575 = vset.pattern.permute.xlu0 %v593_v1  ;;  %v578_v2 = vld [vmem:[%s823_s1 + $0x8] sm:$0xff]   ;;  %v579_v3 = vld [vmem:[%s823_s1 + $0x10] sm:$0xff]  }
   0x2   :  { %526 = vmatprep.subr.bf16.mxu0 %v577_v0  ;;  %558 = vmatprep.subr.bf16.mxu1 %v577_v0  ;;  %v580_v4 = vld [vmem:[%s823_s1 + $0x18] sm:$0xff]   ;;  %v585_v5 = vld [vmem:[%s824_s0] sm:$0xff]   ;;  %v582_v8 = vld [vmem:[%s823_s1 + $0x28] sm:$0xff]  }
   0x3   :  { %527 = vmatpush3.bf16.msra.mxu0 %v577_v0  ;;  %566 = vmatpush3.bf16.msra.mxu1 %v577_v0  ;;  %v586_v6 = vld [vmem:[%s824_s0 + $0x20] sm:$0xff]   ;;  %v332_v9 = vld [vmem:[%s825_s3 + $0x10] sm:$0xff]  ;;  %v333_v11 = vld [vmem:[%s825_s3 + $0x18] sm:$0xff] }
   0x4   :  { %528 = vmatprep.subr.bf16.mxu0 %v578_v2  ;;  %559 = vmatprep.subr.bf16.mxu1 %v578_v2  ;;  %v581_v7 = vld [vmem:[%s823_s1 + $0x20] sm:$0xff]   ;;  %v331_v12 = vld [vmem:[%s825_s3 + $0x8] sm:$0xff]  ;;  %v583_v13 = vld [vmem:[%s823_s1 + $0x30] sm:$0xff]  }
   0x5   :  { %542 = vmatprep.mubr.bf16.mxu0 %v585_v5  ;;  %550 = vmatprep.mubr.bf16.mxu1 %v586_v6  ;;  %v330_v10 = vld [vmem:[%s825_s3] sm:$0xff]  ;;  %v335_v14 = vld [vmem:[%s825_s3 + $0x28] sm:$0xff]  ;;  %v584_v16 = vld [vmem:[%s823_s1 + $0x38] sm:$0xff]  }
   0x6   :  { %374 = vperm.xlu1 %576, %v332_v9   ;;  %364 = vperm.xlu0 %575, %v330_v10   ;;  %v334_v15 = vld [vmem:[%s825_s3 + $0x20] sm:$0xff]  ;;  %v337_v17 = vld [vmem:[%s825_s3 + $0x38] sm:$0xff]  ;;  %v336_v18 = vld [vmem:[%s825_s3 + $0x30] sm:$0xff] }
   0x7   :  { %529 = vmatpush3.bf16.msra.mxu0 %v578_v2  ;;  %567 = vmatpush3.bf16.msra.mxu1 %v578_v2  ;;  %v587_v19 = vld [vmem:[%s824_s0 + $0x8] sm:$0xff]   ;;  %v338_v22 = vld [vmem:[%s825_s3 + $0x40] sm:$0xff]  ;;  %v589_v23 = vld [vmem:[%s824_s0 + $0x10] sm:$0xff]  }
   0x8   :  { %530 = vmatprep.subr.bf16.mxu0 %v579_v3  ;;  %560 = vmatprep.subr.bf16.mxu1 %v579_v3  ;;  %v588_v20 = vld [vmem:[%s824_s0 + $0x28] sm:$0xff]   ;;  %v590_v24 = vld [vmem:[%s824_s0 + $0x30] sm:$0xff]   ;;  %v341_v25 = vld [vmem:[%s825_s3 + $0x58] sm:$0xff] }
   0x9   :  { %v339_v21 = vld [vmem:[%s825_s3 + $0x48] sm:$0xff]  ;;  %v340_v26 = vld [vmem:[%s825_s3 + $0x50] sm:$0xff]  ;;  %v591_v27 = vld [vmem:[%s824_s0 + $0x18] sm:$0xff]  }
   0xa   :  { %379 = vperm.xlu1 %576, %v333_v11   ;;  %369 = vperm.xlu0 %575, %v331_v12   ;;  %v592_v28 = vld [vmem:[%s824_s0 + $0x38] sm:$0xff]   ;;  %v343_v29 = vld [vmem:[%s825_s3 + $0x68] sm:$0xff]  ;;  %v342_v30 = vld [vmem:[%s825_s3 + $0x60] sm:$0xff] }
   0xb   :  { %531 = vmatpush3.bf16.msra.mxu0 %v579_v3  ;;  %568 = vmatpush3.bf16.msra.mxu1 %v579_v3  ;;  %v345_v31 = vld [vmem:[%s825_s3 + $0x78] sm:$0xff]  ;;  %v344_v32 = vld [vmem:[%s825_s3 + $0x70] sm:$0xff]  ;;  %v314_v54 = vld [vmem:[%s826_s2] sm:$0xff] }
   0xc   :  { %532 = vmatprep.subr.bf16.mxu0 %v580_v4  ;;  %561 = vmatprep.subr.bf16.mxu1 %v580_v4  ;;  %v316_v48 = vld [vmem:[%s826_s2 + $0x10] sm:$0xff]  ;;  %v322_v56 = vld [vmem:[%s826_s2 + $0x40] sm:$0xff]  ;;  %v317_v60 = vld [vmem:[%s826_s2 + $0x18] sm:$0xff] }
   0xd   :  { %v324_v50 = vld [vmem:[%s826_s2 + $0x50] sm:$0xff]  ;;  %v325_v62 = vld [vmem:[%s826_s2 + $0x58] sm:$0xff]  ;;  %v323_v6 = vld [vmem:[%s826_s2 + $0x48] sm:$0xff] }
   0xe   :  { %389 = vperm.xlu1 %576, %v335_v14   ;;  %384 = vperm.xlu0 %575, %v334_v15  }
   0xf   :  { %533 = vmatpush3.bf16.msra.mxu0 %v580_v4  ;;  %569 = vmatpush3.bf16.msra.mxu1 %v580_v4  ;;  %v315_v4 = vld [vmem:[%s826_s2 + $0x8] sm:$0xff] }
  0x10   :  { %534 = vmatprep.subr.bf16.mxu0 %v581_v7  ;;  %562 = vmatprep.subr.bf16.mxu1 %v581_v7 }
  0x12   :  { %399 = vperm.xlu1 %576, %v337_v17   ;;  %394 = vperm.xlu0 %575, %v336_v18   ;;  %v320_v18 = vld [vmem:[%s826_s2 + $0x30] sm:$0xff] }
  0x13   :  { %535 = vmatpush3.bf16.msra.mxu0 %v581_v7  ;;  %570 = vmatpush3.bf16.msra.mxu1 %v581_v7 }
  0x14   :  { %536 = vmatprep.subr.bf16.mxu0 %v582_v8  ;;  %563 = vmatprep.subr.bf16.mxu1 %v582_v8 }
  0x16   :  { %409 = vperm.xlu1 %576, %v339_v21   ;;  %404 = vperm.xlu0 %575, %v338_v22  }
  0x17   :  { %537 = vmatpush3.bf16.msra.mxu0 %v582_v8  ;;  %571 = vmatpush3.bf16.msra.mxu1 %v582_v8 }
  0x18   :  { %538 = vmatprep.subr.bf16.mxu0 %v583_v13  ;;  %564 = vmatprep.subr.bf16.mxu1 %v583_v13 }
  0x1a   :  { %419 = vperm.xlu1 %576, %v341_v25   ;;  %414 = vperm.xlu0 %575, %v340_v26   ;;  %v326_v26 = vld [vmem:[%s826_s2 + $0x60] sm:$0xff] }
  0x1b   :  { %539 = vmatpush3.bf16.msra.mxu0 %v583_v13  ;;  %572 = vmatpush3.bf16.msra.mxu1 %v583_v13 }
  0x1c   :  { %540 = vmatprep.subr.bf16.mxu0 %v584_v16  ;;  %565 = vmatprep.subr.bf16.mxu1 %v584_v16 }
  0x1e   :  { %429 = vperm.xlu1 %576, %v343_v29   ;;  %424 = vperm.xlu0 %575, %v342_v30   ;;  %v321_v30 = vld [vmem:[%s826_s2 + $0x38] sm:$0xff] }
  0x1f   :  { %541 = vmatpush3.bf16.msra.mxu0 %v584_v16  ;;  %573 = vmatpush3.bf16.msra.mxu1 %v584_v16 }
  0x22   :  { %543 = vmatmul.mubr.bf16.vlgmr.msra.gmra.mrb[0].mxu0 %v587_v19  ;;  %551 = vmatmul.mubr.bf16.vlgmr.msra.gmra.mrb[0].mxu1 %v588_v20  ;;  %v328_v20 = vld [vmem:[%s826_s2 + $0x70] sm:$0xff] }
  0x23   :  { %546 = vmatprep.mubr.bf16.mxu0 %v589_v23  ;;  %554 = vmatprep.mubr.bf16.mxu1 %v590_v24  ;;  %v318_v24 = vld [vmem:[%s826_s2 + $0x20] sm:$0xff] }
  0x24   :  { %439 = vperm.xlu1 %576, %v345_v31   ;;  %434 = vperm.xlu0 %575, %v344_v32   ;;  %v329_v32 = vld [vmem:[%s826_s2 + $0x78] sm:$0xff] }
  0x2a   :  { %547 = vmatmul.mubr.bf16.gmra.mrb[4].mxu0 %v591_v27  ;;  %555 = vmatmul.mubr.bf16.gmra.mrb[4].mxu1 %v592_v28 }
  0x85   :  { %v375_v33 = vpop.permute.xlu1 %374  ;;  %v365_v34 = vpop.permute.xlu0 %364 }
  0x89   :  { %v380_v35 = vpop.permute.xlu1 %379  ;;  %v370_v36 = vpop.permute.xlu0 %369 }
  0x8d   :  { %v715_v37 = vpop.permute.xlu1 %389  ;;  %v717_v38 = vpop.permute.xlu0 %384 }
  0x91   :  { %v719_v39 = vpop.permute.xlu1 %399  ;;  %v395_v40 = vpop.permute.xlu0 %394 }
  0x95   :  { %v410_v41 = vpop.permute.xlu1 %409  ;;  %v405_v42 = vpop.permute.xlu0 %404 }
  0x99   :  { %v420_v43 = vpop.permute.xlu1 %419  ;;  %v415_v44 = vpop.permute.xlu0 %414 }
  0x9d   :  { %v721_v45 = vpop.permute.xlu1 %429  ;;  %v425_v46 = vpop.permute.xlu0 %424 }
  0xa3   :  { %v440_v15 = vpop.permute.xlu1 %439  ;;  %v435_v16 = vpop.permute.xlu0 %434 }
  0xf5   :  { %v544_v47 = vpop.f32.mrb[0].mxu0  ;;  %v552_v49 = vpop.f32.mrb[0].mxu1 }
  0xf6   :  { %v444_v51 = vmul.f32 %v544_v47, %v375_v33  ;;  %v452_v52 = vmul.f32 %v552_v49, %v415_v44  ;;  %v216_v53 = vpop.f32.mrb[1].mxu0  ;;  %v248_v55 = vpop.f32.mrb[1].mxu1 }
  0xf7   :  { %v442_v57 = vmul.f32 %v365_v34, %v216_v53  ;;  %v450_v58 = vmul.f32 %v405_v42, %v248_v55  ;;  %v545_v59 = vpop.f32.mrb[2].mxu0  ;;  %v553_v61 = vpop.f32.mrb[2].mxu1  ;;  %v327_v42 = vld [vmem:[%s826_s2 + $0x68] sm:$0xff] }
  0xf8   :  { %v460_v63 = vadd.f32 %v444_v51, %v316_v48  ;;  %v468_v0 = vadd.f32 %v452_v52, %v324_v50  ;;  %v445_v1 = vmul.f32 %v545_v59, %v380_v35  ;;  %v453_v2 = vmul.f32 %v553_v61, %v420_v43  ;;  %v219_v3 = vpop.f32.mrb[3].mxu0  ;;  %v251_v5 = vpop.f32.mrb[3].mxu1 }
  0xf9   :  { %v458_v7 = vadd.f32 %v442_v57, %v314_v54  ;;  %v466_v8 = vadd.f32 %v450_v58, %v322_v56  ;;  %v443_v9 = vmul.f32 %v370_v36, %v219_v3  ;;  %v451_v10 = vmul.f32 %v410_v41, %v251_v5 }
  0xfa   :  { %476 = vst [vmem:[%s827_s4 + $0x10] sm:$0xff] %v460_v63  ;;  %484 = vst [vmem:[%s827_s4 + $0x50] sm:$0xff] %v468_v0  ;;  %v461_v11 = vadd.f32 %v445_v1, %v317_v60  ;;  %v469_v12 = vadd.f32 %v453_v2, %v325_v62 }
  0xfb   :  { %474 = vst [vmem:[%s827_s4] sm:$0xff] %v458_v7  ;;  %482 = vst [vmem:[%s827_s4 + $0x40] sm:$0xff] %v466_v8  ;;  %v459_v13 = vadd.f32 %v443_v9, %v315_v4  ;;  %v467_v14 = vadd.f32 %v451_v10, %v323_v6 }
  0xfc   :  { %477 = vst [vmem:[%s827_s4 + $0x18] sm:$0xff] %v461_v11  ;;  %485 = vst [vmem:[%s827_s4 + $0x58] sm:$0xff] %v469_v12 }
  0xfd   :  { %475 = vst [vmem:[%s827_s4 + $0x8] sm:$0xff] %v459_v13  ;;  %483 = vst [vmem:[%s827_s4 + $0x48] sm:$0xff] %v467_v14  ;;  %v548_v17 = vpop.f32.mrb[4].mxu0  ;;  %v556_v19 = vpop.f32.mrb[4].mxu1 }
  0xfe   :  { %v448_v21 = vmul.f32 %v548_v17, %v395_v40  ;;  %v456_v22 = vmul.f32 %v556_v19, %v435_v16  ;;  %v232_v23 = vpop.f32.mrb[5].mxu0  ;;  %v264_v25 = vpop.f32.mrb[5].mxu1 }
  0xff   :  { %v446_v27 = vmul.f32 %v717_v38, %v232_v23  ;;  %v454_v28 = vmul.f32 %v425_v46, %v264_v25  ;;  %v549_v29 = vpop.f32.mrb[6].mxu0  ;;  %v557_v31 = vpop.f32.mrb[6].mxu1  ;;  %v319_v38 = vld [vmem:[%s826_s2 + $0x28] sm:$0xff] }
 0x100   :  { %v464_v33 = vadd.f32 %v448_v21, %v320_v18  ;;  %v472_v34 = vadd.f32 %v456_v22, %v328_v20  ;;  %v449_v35 = vmul.f32 %v549_v29, %v719_v39  ;;  %v457_v36 = vmul.f32 %v557_v31, %v440_v15  ;;  %v235_v40 = vpop.f32.mrb[7].mxu0  ;;  %v267_v41 = vpop.f32.mrb[7].mxu1 }
 0x101   :  { %v462_v43 = vadd.f32 %v446_v27, %v318_v24  ;;  %v470_v44 = vadd.f32 %v454_v28, %v326_v26  ;;  %v447_v46 = vmul.f32 %v715_v37, %v235_v40  ;;  %v455_v47 = vmul.f32 %v721_v45, %v267_v41 }
 0x102   :  { %480 = vst [vmem:[%s827_s4 + $0x30] sm:$0xff] %v464_v33  ;;  %488 = vst [vmem:[%s827_s4 + $0x70] sm:$0xff] %v472_v34  ;;  %v465_v39 = vadd.f32 %v449_v35, %v321_v30  ;;  %v473_v48 = vadd.f32 %v457_v36, %v329_v32 }
 0x103   :  { %478 = vst [vmem:[%s827_s4 + $0x20] sm:$0xff] %v462_v43  ;;  %486 = vst [vmem:[%s827_s4 + $0x60] sm:$0xff] %v470_v44  ;;  %v463_v37 = vadd.f32 %v447_v46, %v319_v38  ;;  %v471_v45 = vadd.f32 %v455_v47, %v327_v42 }
 0x104   :  { %481 = vst [vmem:[%s827_s4 + $0x38] sm:$0xff] %v465_v39  ;;  %489 = vst [vmem:[%s827_s4 + $0x78] sm:$0xff] %v473_v48 }
 0x105   :  { %479 = vst [vmem:[%s827_s4 + $0x28] sm:$0xff] %v463_v37  ;;  %487 = vst [vmem:[%s827_s4 + $0x68] sm:$0xff] %v471_v45 }

// kernel: graphsage_forward.2
= control target key start
LH: loop header
LB: loop body
LE: loop exit
PB: predicated region body
PF: predicated region fallthrough
CT: control target
= control target key end

     0   :  { %v609_v1 = vmov 0   ;;  %s815_s1 = inlined_call_operand.vmem [shape: bf16[128,128], index: 1, kind: input, shape index: {}]   ;;  %s816_s0 = inlined_call_operand.vmem [shape: bf16[128,128], index: 0, kind: input, shape index: {}]   ;;  %s817_s3 = inlined_call_operand.vmem [shape: f32[128,1], index: 3, kind: input, shape index: {}]   ;;  %s818_s2 = inlined_call_operand.vmem [shape: f32[128,128], index: 2, kind: input, shape index: {}]   ;;  %s819_s4 = inlined_call_operand.vmem [shape: bf16[128,128], index: 4, kind: output, shape index: {}]  }
   0x1   :  { %v593_v0 = vld [vmem:[%s815_s1] sm:$0xff]   ;;  %592 = vset.pattern.permute.xlu1 %v609_v1  ;;  %591 = vset.pattern.permute.xlu0 %v609_v1  ;;  %v594_v2 = vld [vmem:[%s815_s1 + $0x8] sm:$0xff]   ;;  %v595_v3 = vld [vmem:[%s815_s1 + $0x10] sm:$0xff]  }
   0x2   :  { %542 = vmatprep.subr.bf16.mxu0 %v593_v0  ;;  %574 = vmatprep.subr.bf16.mxu1 %v593_v0  ;;  %v596_v4 = vld [vmem:[%s815_s1 + $0x18] sm:$0xff]   ;;  %v601_v5 = vld [vmem:[%s816_s0] sm:$0xff]   ;;  %v598_v8 = vld [vmem:[%s815_s1 + $0x28] sm:$0xff]  }
   0x3   :  { %543 = vmatpush3.bf16.msra.mxu0 %v593_v0  ;;  %582 = vmatpush3.bf16.msra.mxu1 %v593_v0  ;;  %v602_v6 = vld [vmem:[%s816_s0 + $0x20] sm:$0xff]   ;;  %v332_v9 = vld [vmem:[%s817_s3 + $0x10] sm:$0xff]  ;;  %v333_v11 = vld [vmem:[%s817_s3 + $0x18] sm:$0xff] }
   0x4   :  { %544 = vmatprep.subr.bf16.mxu0 %v594_v2  ;;  %575 = vmatprep.subr.bf16.mxu1 %v594_v2  ;;  %v597_v7 = vld [vmem:[%s815_s1 + $0x20] sm:$0xff]   ;;  %v331_v12 = vld [vmem:[%s817_s3 + $0x8] sm:$0xff]  ;;  %v599_v13 = vld [vmem:[%s815_s1 + $0x30] sm:$0xff]  }
   0x5   :  { %558 = vmatprep.mubr.bf16.mxu0 %v601_v5  ;;  %566 = vmatprep.mubr.bf16.mxu1 %v602_v6  ;;  %v330_v10 = vld [vmem:[%s817_s3] sm:$0xff]  ;;  %v335_v14 = vld [vmem:[%s817_s3 + $0x28] sm:$0xff]  ;;  %v600_v16 = vld [vmem:[%s815_s1 + $0x38] sm:$0xff]  }
   0x6   :  { %374 = vperm.xlu1 %592, %v332_v9   ;;  %364 = vperm.xlu0 %591, %v330_v10   ;;  %v334_v15 = vld [vmem:[%s817_s3 + $0x20] sm:$0xff]  ;;  %v337_v17 = vld [vmem:[%s817_s3 + $0x38] sm:$0xff]  ;;  %v336_v18 = vld [vmem:[%s817_s3 + $0x30] sm:$0xff] }
   0x7   :  { %545 = vmatpush3.bf16.msra.mxu0 %v594_v2  ;;  %583 = vmatpush3.bf16.msra.mxu1 %v594_v2  ;;  %v603_v19 = vld [vmem:[%s816_s0 + $0x8] sm:$0xff]   ;;  %v338_v22 = vld [vmem:[%s817_s3 + $0x40] sm:$0xff]  ;;  %v605_v23 = vld [vmem:[%s816_s0 + $0x10] sm:$0xff]  }
   0x8   :  { %546 = vmatprep.subr.bf16.mxu0 %v595_v3  ;;  %576 = vmatprep.subr.bf16.mxu1 %v595_v3  ;;  %v604_v20 = vld [vmem:[%s816_s0 + $0x28] sm:$0xff]   ;;  %v606_v24 = vld [vmem:[%s816_s0 + $0x30] sm:$0xff]   ;;  %v341_v25 = vld [vmem:[%s817_s3 + $0x58] sm:$0xff] }
   0x9   :  { %v339_v21 = vld [vmem:[%s817_s3 + $0x48] sm:$0xff]  ;;  %v340_v26 = vld [vmem:[%s817_s3 + $0x50] sm:$0xff]  ;;  %v607_v27 = vld [vmem:[%s816_s0 + $0x18] sm:$0xff]  }
   0xa   :  { %379 = vperm.xlu1 %592, %v333_v11   ;;  %369 = vperm.xlu0 %591, %v331_v12   ;;  %v608_v28 = vld [vmem:[%s816_s0 + $0x38] sm:$0xff]   ;;  %v343_v29 = vld [vmem:[%s817_s3 + $0x68] sm:$0xff]  ;;  %v342_v30 = vld [vmem:[%s817_s3 + $0x60] sm:$0xff] }
   0xb   :  { %547 = vmatpush3.bf16.msra.mxu0 %v595_v3  ;;  %584 = vmatpush3.bf16.msra.mxu1 %v595_v3  ;;  %v345_v31 = vld [vmem:[%s817_s3 + $0x78] sm:$0xff]  ;;  %v344_v32 = vld [vmem:[%s817_s3 + $0x70] sm:$0xff]  ;;  %v314_v54 = vld [vmem:[%s818_s2] sm:$0xff] }
   0xc   :  { %548 = vmatprep.subr.bf16.mxu0 %v596_v4  ;;  %577 = vmatprep.subr.bf16.mxu1 %v596_v4  ;;  %v316_v48 = vld [vmem:[%s818_s2 + $0x10] sm:$0xff]  ;;  %v322_v56 = vld [vmem:[%s818_s2 + $0x40] sm:$0xff]  ;;  %v317_v60 = vld [vmem:[%s818_s2 + $0x18] sm:$0xff] }
   0xd   :  { %v324_v50 = vld [vmem:[%s818_s2 + $0x50] sm:$0xff]  ;;  %v325_v62 = vld [vmem:[%s818_s2 + $0x58] sm:$0xff]  ;;  %v323_v6 = vld [vmem:[%s818_s2 + $0x48] sm:$0xff] }
   0xe   :  { %389 = vperm.xlu1 %592, %v335_v14   ;;  %384 = vperm.xlu0 %591, %v334_v15  }
   0xf   :  { %549 = vmatpush3.bf16.msra.mxu0 %v596_v4  ;;  %585 = vmatpush3.bf16.msra.mxu1 %v596_v4  ;;  %v315_v4 = vld [vmem:[%s818_s2 + $0x8] sm:$0xff] }
  0x10   :  { %550 = vmatprep.subr.bf16.mxu0 %v597_v7  ;;  %578 = vmatprep.subr.bf16.mxu1 %v597_v7 }
  0x12   :  { %399 = vperm.xlu1 %592, %v337_v17   ;;  %394 = vperm.xlu0 %591, %v336_v18  }
  0x13   :  { %551 = vmatpush3.bf16.msra.mxu0 %v597_v7  ;;  %586 = vmatpush3.bf16.msra.mxu1 %v597_v7 }
  0x14   :  { %552 = vmatprep.subr.bf16.mxu0 %v598_v8  ;;  %579 = vmatprep.subr.bf16.mxu1 %v598_v8 }
  0x16   :  { %409 = vperm.xlu1 %592, %v339_v21   ;;  %404 = vperm.xlu0 %591, %v338_v22   ;;  %v320_v21 = vld [vmem:[%s818_s2 + $0x30] sm:$0xff] }
  0x17   :  { %553 = vmatpush3.bf16.msra.mxu0 %v598_v8  ;;  %587 = vmatpush3.bf16.msra.mxu1 %v598_v8  ;;  %v328_v22 = vld [vmem:[%s818_s2 + $0x70] sm:$0xff] }
  0x18   :  { %554 = vmatprep.subr.bf16.mxu0 %v599_v13  ;;  %580 = vmatprep.subr.bf16.mxu1 %v599_v13 }
  0x1a   :  { %419 = vperm.xlu1 %592, %v341_v25   ;;  %414 = vperm.xlu0 %591, %v340_v26  }
  0x1b   :  { %555 = vmatpush3.bf16.msra.mxu0 %v599_v13  ;;  %588 = vmatpush3.bf16.msra.mxu1 %v599_v13 }
  0x1c   :  { %556 = vmatprep.subr.bf16.mxu0 %v600_v16  ;;  %581 = vmatprep.subr.bf16.mxu1 %v600_v16 }
  0x1e   :  { %429 = vperm.xlu1 %592, %v343_v29   ;;  %424 = vperm.xlu0 %591, %v342_v30  }
  0x1f   :  { %557 = vmatpush3.bf16.msra.mxu0 %v600_v16  ;;  %589 = vmatpush3.bf16.msra.mxu1 %v600_v16 }
  0x22   :  { %559 = vmatmul.mubr.bf16.vlgmr.msra.gmra.mrb[0].mxu0 %v603_v19  ;;  %567 = vmatmul.mubr.bf16.vlgmr.msra.gmra.mrb[0].mxu1 %v604_v20 }
  0x23   :  { %562 = vmatprep.mubr.bf16.mxu0 %v605_v23  ;;  %570 = vmatprep.mubr.bf16.mxu1 %v606_v24 }
  0x24   :  { %439 = vperm.xlu1 %592, %v345_v31   ;;  %434 = vperm.xlu0 %591, %v344_v32  }
  0x2a   :  { %563 = vmatmul.mubr.bf16.gmra.mrb[4].mxu0 %v607_v27  ;;  %571 = vmatmul.mubr.bf16.gmra.mrb[4].mxu1 %v608_v28 }
  0x85   :  { %v375_v33 = vpop.permute.xlu1 %374  ;;  %v365_v34 = vpop.permute.xlu0 %364 }
  0x89   :  { %v380_v35 = vpop.permute.xlu1 %379  ;;  %v370_v36 = vpop.permute.xlu0 %369 }
  0x8d   :  { %v731_v37 = vpop.permute.xlu1 %389  ;;  %v733_v38 = vpop.permute.xlu0 %384 }
  0x91   :  { %v735_v39 = vpop.permute.xlu1 %399  ;;  %v395_v40 = vpop.permute.xlu0 %394 }
  0x95   :  { %v410_v41 = vpop.permute.xlu1 %409  ;;  %v405_v42 = vpop.permute.xlu0 %404 }
  0x99   :  { %v420_v43 = vpop.permute.xlu1 %419  ;;  %v415_v44 = vpop.permute.xlu0 %414 }
  0x9d   :  { %v737_v45 = vpop.permute.xlu1 %429  ;;  %v425_v46 = vpop.permute.xlu0 %424 }
  0xa3   :  { %v440_v15 = vpop.permute.xlu1 %439  ;;  %v435_v16 = vpop.permute.xlu0 %434 }
  0xf5   :  { %v560_v47 = vpop.f32.mrb[0].mxu0  ;;  %v568_v49 = vpop.f32.mrb[0].mxu1 }
  0xf6   :  { %v444_v51 = vmul.f32 %v560_v47, %v375_v33  ;;  %v452_v52 = vmul.f32 %v568_v49, %v415_v44  ;;  %v216_v53 = vpop.f32.mrb[1].mxu0  ;;  %v248_v55 = vpop.f32.mrb[1].mxu1  ;;  %v329_v49 = vld [vmem:[%s818_s2 + $0x78] sm:$0xff] }
  0xf7   :  { %v442_v57 = vmul.f32 %v365_v34, %v216_v53  ;;  %v450_v58 = vmul.f32 %v405_v42, %v248_v55  ;;  %v561_v59 = vpop.f32.mrb[2].mxu0  ;;  %v569_v61 = vpop.f32.mrb[2].mxu1  ;;  %v318_v34 = vld [vmem:[%s818_s2 + $0x20] sm:$0xff]  ;;  %v319_v53 = vld [vmem:[%s818_s2 + $0x28] sm:$0xff] }
  0xf8   :  { %v460_v63 = vadd.f32 %v444_v51, %v316_v48  ;;  %v468_v0 = vadd.f32 %v452_v52, %v324_v50  ;;  %v445_v1 = vmul.f32 %v561_v59, %v380_v35  ;;  %v453_v2 = vmul.f32 %v569_v61, %v420_v43  ;;  %v219_v3 = vpop.f32.mrb[3].mxu0  ;;  %v251_v5 = vpop.f32.mrb[3].mxu1  ;;  %v327_v55 = vld [vmem:[%s818_s2 + $0x68] sm:$0xff] }
  0xf9   :  { %v458_v7 = vadd.f32 %v442_v57, %v314_v54  ;;  %v466_v8 = vadd.f32 %v450_v58, %v322_v56  ;;  %v443_v9 = vmul.f32 %v370_v36, %v219_v3  ;;  %v451_v10 = vmul.f32 %v410_v41, %v251_v5  ;;  %v326_v36 = vld [vmem:[%s818_s2 + $0x60] sm:$0xff] }
  0xfa   :  { %v461_v11 = vadd.f32 %v445_v1, %v317_v60  ;;  %v469_v12 = vadd.f32 %v453_v2, %v325_v62  ;;  %v476_v17 = vmax.f32 %v460_v63, 0.0  ;;  %v484_v18 = vmax.f32 %v468_v0, 0.0 }
  0xfb   :  { %v459_v13 = vadd.f32 %v443_v9, %v315_v4  ;;  %v467_v14 = vadd.f32 %v451_v10, %v323_v6  ;;  %v474_v23 = vmax.f32 %v458_v7, 0.0  ;;  %v482_v24 = vmax.f32 %v466_v8, 0.0 }
  0xfc   :  { %v477_v19 = vmax.f32 %v461_v11, 0.0  ;;  %v485_v20 = vmax.f32 %v469_v12, 0.0 }
  0xfd   :  { %v475_v25 = vmax.f32 %v459_v13, 0.0  ;;  %v483_v26 = vmax.f32 %v467_v14, 0.0  ;;  %v564_v27 = vpop.f32.mrb[4].mxu0  ;;  %v572_v28 = vpop.f32.mrb[4].mxu1 }
  0xfe   :  { %v491_v29 = vpack.c.bf16 %v477_v19, %v476_v17  ;;  %v495_v30 = vpack.c.bf16 %v485_v20, %v484_v18  ;;  %v448_v31 = vmul.f32 %v564_v27, %v395_v40  ;;  %v456_v32 = vmul.f32 %v572_v28, %v435_v16  ;;  %v232_v33 = vpop.f32.mrb[5].mxu0  ;;  %v264_v35 = vpop.f32.mrb[5].mxu1  ;;  %v321_v40 = vld [vmem:[%s818_s2 + $0x38] sm:$0xff] }
  0xff   :  { %v490_v41 = vpack.c.bf16 %v475_v25, %v474_v23  ;;  %v494_v42 = vpack.c.bf16 %v483_v26, %v482_v24  ;;  %v446_v43 = vmul.f32 %v733_v38, %v232_v33  ;;  %v454_v44 = vmul.f32 %v425_v46, %v264_v35  ;;  %v565_v47 = vpop.f32.mrb[6].mxu0  ;;  %v573_v48 = vpop.f32.mrb[6].mxu1 }
 0x100   :  { %499 = vst [vmem:[%s819_s4 + $0x8] sm:$0xff] %v491_v29  ;;  %503 = vst [vmem:[%s819_s4 + $0x28] sm:$0xff] %v495_v30  ;;  %v464_v38 = vadd.f32 %v448_v31, %v320_v21  ;;  %v472_v46 = vadd.f32 %v456_v32, %v328_v22  ;;  %v449_v50 = vmul.f32 %v565_v47, %v735_v39  ;;  %v235_v52 = vpop.f32.mrb[7].mxu0  ;;  %v267_v54 = vpop.f32.mrb[7].mxu1 }
 0x101   :  { %v457_v51 = vmul.f32 %v573_v48, %v440_v15  ;;  %498 = vst [vmem:[%s819_s4] sm:$0xff] %v490_v41  ;;  %502 = vst [vmem:[%s819_s4 + $0x20] sm:$0xff] %v494_v42  ;;  %v462_v39 = vadd.f32 %v446_v43, %v318_v34  ;;  %v470_v56 = vadd.f32 %v454_v44, %v326_v36 }
 0x102   :  { %v447_v57 = vmul.f32 %v731_v37, %v235_v52  ;;  %v455_v58 = vmul.f32 %v737_v45, %v267_v54  ;;  %v465_v59 = vadd.f32 %v449_v50, %v321_v40  ;;  %v480_v63 = vmax.f32 %v464_v38, 0.0 }
 0x103   :  { %v473_v60 = vadd.f32 %v457_v51, %v329_v49  ;;  %v488_v0 = vmax.f32 %v472_v46, 0.0  ;;  %v478_v3 = vmax.f32 %v462_v39, 0.0  ;;  %v486_v4 = vmax.f32 %v470_v56, 0.0 }
 0x104   :  { %v463_v61 = vadd.f32 %v447_v57, %v319_v53  ;;  %v471_v62 = vadd.f32 %v455_v58, %v327_v55  ;;  %v481_v1 = vmax.f32 %v465_v59, 0.0 }
 0x105   :  { %v489_v2 = vmax.f32 %v473_v60, 0.0 }
 0x106   :  { %v479_v5 = vmax.f32 %v463_v61, 0.0  ;;  %v487_v6 = vmax.f32 %v471_v62, 0.0  ;;  %v493_v7 = vpack.c.bf16 %v481_v1, %v480_v63 }
 0x107   :  { %v497_v8 = vpack.c.bf16 %v489_v2, %v488_v0 }
 0x108   :  { %v492_v9 = vpack.c.bf16 %v479_v5, %v478_v3  ;;  %v496_v10 = vpack.c.bf16 %v487_v6, %v486_v4  ;;  %501 = vst [vmem:[%s819_s4 + $0x18] sm:$0xff] %v493_v7 }
 0x109   :  { %505 = vst [vmem:[%s819_s4 + $0x38] sm:$0xff] %v497_v8 }
 0x10a   :  { %500 = vst [vmem:[%s819_s4 + $0x10] sm:$0xff] %v492_v9  ;;  %504 = vst [vmem:[%s819_s4 + $0x30] sm:$0xff] %v496_v10 }

</bundles_post_ra>
